<compile_context>
chip_gen: v6e
topology: v6e:2x2x1
jax: 0.10.0
libtpu: 0.0.40
codegen_flags: <defaults>
</compile_context>

<pallas_src>
import functools

import jax
import jax.numpy as jnp
from jax.experimental import pallas as pl
from jax.experimental.pallas import tpu as pltpu


def _pair(v):
    return (v, v) if isinstance(v, int) else tuple(v)


def _round_up(v, m):
    return (v + m - 1) // m * m


def _sublane_mult(dtype):
    # sublane packing multiple: f32 -> 8, bf16 -> 16, int8/fp8 -> 32
    return {4: 8, 2: 16, 1: 32}.get(jnp.dtype(dtype).itemsize, 8)


# ----------------------------------------------------------------------------- kernels


def _epilogue(acc_f32, p_ref, bn_acti):
    """Fused conv-bias + eval-BatchNorm + PReLU: y = acc*scale + shift, PReLU(alpha)."""
    p = p_ref[...]                                   # (tco, 3) f32
    y = acc_f32 * p[:, 0:1] + p[:, 1:2]
    if bn_acti:
        y = jnp.where(y >= 0.0, y, p[:, 2:3] * y)
    return y


def _conv_fused_kernel(x_ref, w_ref, p_ref, o_ref, slab_ref=None, *,
                       taps, C_pad, tL, bn_acti, lane_tiled):
    """groups == 1.  grid = (B, n_lane_tiles, n_cout_tiles).

    x_ref   : (1, C_pad, L_in)    zero-padded, lane-dense activation slab (per batch)
    w_ref   : (tco, T*C_pad)      lane-dense weights (K on the lane axis)
    p_ref   : (tco, 3)            per-channel [scale, shift, prelu_alpha] (f32)
    o_ref   : (1, tco, tL)        stride-1 "wide" output lane tile
    slab_ref: (T*C_pad, tL)       VMEM im2col slab scratch (absent for 1x1 convs)
    """
    base = pl.multiple_of(pl.program_id(1) * tL, 128) if lane_tiled else 0

    if slab_ref is None:
        # 1x1 conv: single tap, dot straight against the input slab (no copy).
        rhs = x_ref[0, :, pl.ds(base + taps[0], tL)]
        acc = jnp.dot(w_ref[...], rhs, preferred_element_type=jnp.float32)
    else:
        # Build the im2col slab once per (batch, lane-tile); it is reused across the
        # inner ("arbitrary") C_out-tile axis because the scratch persists.
        @pl.when(pl.program_id(2) == 0)
        def _build_slab():
            for t, off in enumerate(taps):
                slab_ref[t * C_pad:(t + 1) * C_pad, :] = \
                    x_ref[0, :, pl.ds(base + off, tL)]

        # ONE fused-K MXU matmul (K = T*C_pad) instead of T accumulate-dots.
        acc = jnp.dot(w_ref[...], slab_ref[...], preferred_element_type=jnp.float32)

    o_ref[0] = _epilogue(acc, p_ref, bn_acti).astype(o_ref.dtype)


def _conv_dw_kernel(x_ref, w_ref, p_ref, o_ref, *, taps, tL, bn_acti, lane_tiled):
    """Depthwise (groups == C_in == C_out).  grid = (B, n_cout_tiles, n_lane_tiles).

    x_ref: (1, tco, L_in)   channel-tiled input slab
    w_ref: (tco, T)         lane-dense per-channel taps
    o_ref: (1, tco, tL)
    """
    base = pl.multiple_of(pl.program_id(2) * tL, 128) if lane_tiled else 0
    tco = o_ref.shape[1]
    w = w_ref[...].astype(jnp.float32)               # (tco, T)
    acc = jnp.zeros((tco, tL), jnp.float32)
    for t, off in enumerate(taps):
        s = x_ref[0, :, pl.ds(base + off, tL)].astype(jnp.float32)
        acc = acc + w[:, t:t + 1] * s                # per-channel VPU FMA, no MXU
    o_ref[0] = _epilogue(acc, p_ref, bn_acti).astype(o_ref.dtype)


def _conv_grouped_kernel(x_ref, w_ref, p_ref, o_ref, *, taps, cig, cog, groups,
                         tL, bn_acti, lane_tiled):
    """General grouped conv fallback (1 < groups < C_in; not used by SEDNet).
    grid = (B, 1, n_lane_tiles).
    TODO(synk): fuse taps into the contraction per group as well if this path ever
    becomes hot (SEDNet only uses groups in {1, nIn}).
    """
    base = pl.multiple_of(pl.program_id(2) * tL, 128) if lane_tiled else 0
    accs = [jnp.zeros((cog, tL), jnp.float32) for _ in range(groups)]
    for t, off in enumerate(taps):
        s = x_ref[0, :, pl.ds(base + off, tL)]
        w_tap = w_ref[t]                             # (C_out, cig)
        for g in range(groups):
            accs[g] = accs[g] + jnp.dot(
                w_tap[g * cog:(g + 1) * cog, :], s[g * cig:(g + 1) * cig, :],
                preferred_element_type=jnp.float32)
    acc = jnp.concatenate(accs, axis=0)              # single concat (not per-tap)
    o_ref[0] = _epilogue(acc, p_ref, bn_acti).astype(o_ref.dtype)


# ----------------------------------------------------------------------------- wrapper


def conv_forward(x, weight, bias=None, *, stride=1, padding=0, dilation=(1, 1),
                 groups=1, bn_acti=False, bn_gamma=None, bn_beta=None,
                 bn_mean=None, bn_var=None, prelu_alpha=None, eps=1e-3,
                 compute_dtype=None):
    """Forward pass of SEDNet `Conv` (Conv2d + optional eval-mode BatchNorm2d + PReLU).

    NCHW in / NCHW out.  `compute_dtype` may be set to jnp.bfloat16 to halve the MXU
    and DMA cost where the model tolerates it (f32 accumulation + f32 epilogue kept).
    """
    sH, sW = _pair(stride)
    pH, pW = _pair(padding)
    dH, dW = _pair(dilation)

    B, C_in, H, W = x.shape
    C_out, cig, kH, kW = weight.shape
    assert cig * groups == C_in, "weight / groups mismatch"
    assert C_out % groups == 0
    cog = C_out // groups
    T = kH * kW

    out_dtype = x.dtype
    cdt = jnp.dtype(compute_dtype) if compute_dtype is not None else jnp.dtype(x.dtype)
    itemsize = jnp.dtype(cdt).itemsize
    out_itemsize = jnp.dtype(out_dtype).itemsize
    sub = _sublane_mult(cdt)

    H_pad, W_pad = H + 2 * pH, W + 2 * pW
    H_out = (H_pad - dH * (kH - 1) - 1) // sH + 1
    W_out = (W_pad - dW * (kW - 1) - 1) // sW + 1
    assert H_out > 0 and W_out > 0, "empty conv output"
    H_full = H_pad - dH * (kH - 1)          # stride-1 output rows over the padded grid
    L_raw = H_full * W_pad                  # un-padded lane length of the wide output
    off_max = (kH - 1) * dH * W_pad + (kW - 1) * dW
    taps = tuple(kh * dH * W_pad + kw * dW for kh in range(kH) for kw in range(kW))
    # TODO(synk): for stride > 1 compute only the strided output rows instead of the
    # stride-1 wide output + crop (sH*sW x wasted MXU work; SEDNet is mostly stride 1).

    depthwise = (groups == C_in) and (C_out == C_in)        # cig == cog == 1
    fused = (groups == 1)
    C_pad = _round_up(C_in, sub) if fused else C_in

    # ---- generation-aware VMEM budget.
    try:
        vmem_cap = int(pltpu.get_tpu_info().vmem_capacity_bytes)
    except Exception:
        vmem_cap = 64 * 1024 * 1024
    vmem_limit = vmem_cap * 3 // 4                   # ~48 MiB v7x, ~96 MiB v5e/v6e
    out_blk_cap = (4 if vmem_cap <= 72 * 1024 * 1024 else 12) * 1024 * 1024

    def derive(tl):
        l_out = _round_up(L_raw, tl)
        rows = max(H_pad, -(-(l_out + off_max) // W_pad))
        return l_out, l_out // tl, rows * W_pad, rows - H_pad

    def footprint(tco_, tl):
        _, _, l_in, _ = derive(tl)
        li = _round_up(l_in, 128)
        pb = 2 * _round_up(tco_, 8) * 128 * 4
        ob = 2 * _round_up(tco_, sub) * tl * out_itemsize
        if fused:
            xb = 2 * C_pad * li * itemsize
            wb = 2 * _round_up(tco_, sub) * _round_up(T * C_pad, 128) * itemsize
            sl = _round_up(T * C_pad, sub) * tl * itemsize if T > 1 else 0
        elif depthwise:
            xb = 2 * _round_up(tco_, sub) * li * itemsize
            wb = 2 * _round_up(tco_, sub) * 128 * itemsize
            sl = 0
        else:
            xb = 2 * _round_up(C_in, sub) * li * itemsize
            wb = 2 * T * _round_up(C_out, sub) * _round_up(cig, 128) * itemsize
            sl = 0
        return xb + wb + pb + ob + sl

    # ---- C_out / lane tiling.
    tL = _round_up(L_raw, 128)                       # output lane tile (unmasked vst)
    tco = C_out
    if fused or depthwise:
        while tco % 2 == 0 and (tco // 2) % sub == 0 and \
                tco * tL * out_itemsize > out_blk_cap:
            tco //= 2
    while footprint(tco, tL) > vmem_limit * 85 // 100:
        if tL > 128:
            tL = max(128, (tL // 2 // 128) * 128)
        elif (fused or depthwise) and tco % 2 == 0 and (tco // 2) % sub == 0:
            tco //= 2
        else:
            # TODO(synk): manual-DMA spatial (H) tiling with halo rows for feature maps
            # whose per-batch activation slab alone exceeds VMEM (very large inputs).
            raise NotImplementedError("activation slab exceeds the VMEM budget")
    L_out, n_l, L_in, extra_rows = derive(tL)
    n_co = C_out // tco
    lane_tiled = n_l > 1

    # ---- host-side layout prep: ONE pad (channels + spatial + lane tail) + reshape.
    x_c = x.astype(cdt)
    x_p = jnp.pad(x_c, ((0, 0), (0, C_pad - C_in), (pH, pH + extra_rows), (pW, pW)))
    x_flat = x_p.reshape(B, C_pad, L_in)

    # ---- weights (lane-dense layouts).
    if fused:
        w_r = jnp.transpose(weight, (0, 2, 3, 1)).reshape(C_out, T, C_in)
        if C_pad > C_in:
            w_r = jnp.pad(w_r, ((0, 0), (0, 0), (0, C_pad - C_in)))
        w_arr = w_r.reshape(C_out, T * C_pad).astype(cdt)       # (C_out, K) lane-dense
    elif depthwise:
        w_arr = weight.reshape(C_out, T).astype(cdt)            # (C_out, taps)
    else:
        w_arr = jnp.transpose(weight, (2, 3, 0, 1)).reshape(T, C_out, cig).astype(cdt)

    # ---- fold conv-bias + eval-mode BatchNorm + PReLU into (scale, shift, alpha).
    f32 = jnp.float32
    if bn_acti:
        scale = bn_gamma.astype(f32) / jnp.sqrt(bn_var.astype(f32) + eps)
        shift = bn_beta.astype(f32) - bn_mean.astype(f32) * scale
        if bias is not None:
            shift = shift + bias.astype(f32) * scale
        alpha = prelu_alpha.astype(f32)
    else:
        scale = jnp.ones((C_out,), f32)
        shift = bias.astype(f32) if bias is not None else jnp.zeros((C_out,), f32)
        alpha = jnp.zeros((C_out,), f32)
    params = jnp.stack([scale, shift, alpha], axis=-1)           # (C_out, 3) f32

    # ---- grid / BlockSpecs per path.
    if fused:
        grid = (B, n_l, n_co)            # inner C_out axis reuses the slab (pl.when j==0)
        in_specs = [
            # NOTE: slab is the dominant VMEM user; a single-buffered x BlockSpec
            # (pl.Buffered(1)) would halve its footprint if ever needed.
            pl.BlockSpec((1, C_pad, L_in), lambda b, l, j: (b, 0, 0)),
            pl.BlockSpec((tco, T * C_pad), lambda b, l, j: (j, 0)),
            pl.BlockSpec((tco, 3), lambda b, l, j: (j, 0)),
        ]
        out_spec = pl.BlockSpec((1, tco, tL), lambda b, l, j: (b, j, l))
        scratch = [pltpu.VMEM((T * C_pad, tL), cdt)] if T > 1 else []
        kernel = functools.partial(_conv_fused_kernel, taps=taps, C_pad=C_pad, tL=tL,
                                   bn_acti=bn_acti, lane_tiled=lane_tiled)
        dims = ("parallel", "parallel", "arbitrary")
    elif depthwise:
        grid = (B, n_co, n_l)
        in_specs = [
            pl.BlockSpec((1, tco, L_in), lambda b, j, l: (b, j, 0)),
            pl.BlockSpec((tco, T), lambda b, j, l: (j, 0)),
            pl.BlockSpec((tco, 3), lambda b, j, l: (j, 0)),
        ]
        out_spec = pl.BlockSpec((1, tco, tL), lambda b, j, l: (b, j, l))
        scratch = []
        kernel = functools.partial(_conv_dw_kernel, taps=taps, tL=tL,
                                   bn_acti=bn_acti, lane_tiled=lane_tiled)
        dims = ("parallel", "parallel", "parallel")
    else:
        grid = (B, 1, n_l)
        in_specs = [
            pl.BlockSpec((1, C_in, L_in), lambda b, j, l: (b, 0, 0)),
            pl.BlockSpec((T, C_out, cig), lambda b, j, l: (0, 0, 0)),
            pl.BlockSpec((C_out, 3), lambda b, j, l: (0, 0)),
        ]
        out_spec = pl.BlockSpec((1, C_out, tL), lambda b, j, l: (b, 0, l))
        scratch = []
        kernel = functools.partial(_conv_grouped_kernel, taps=taps, cig=cig, cog=cog,
                                   groups=groups, tL=tL, bn_acti=bn_acti,
                                   lane_tiled=lane_tiled)
        dims = ("parallel", "parallel", "parallel")

    macs = B * C_out * cig * T * L_raw
    bytes_accessed = int(x_flat.size * itemsize + w_arr.size * itemsize
                         + params.size * 4 + B * C_out * L_out * out_itemsize)
    cost = pl.CostEstimate(flops=int(2 * macs), transcendentals=0,
                           bytes_accessed=bytes_accessed)

    out_wide = pl.pallas_call(
        kernel,
        out_shape=jax.ShapeDtypeStruct((B, C_out, L_out), out_dtype),
        grid_spec=pltpu.PrefetchScalarGridSpec(
            num_scalar_prefetch=0,
            grid=grid,
            in_specs=in_specs,
            out_specs=out_spec,
            scratch_shapes=scratch),
        compiler_params=pltpu.CompilerParams(
            dimension_semantics=dims,
            vmem_limit_bytes=int(vmem_limit)),
        cost_estimate=cost,
    )(x_flat, w_arr, params)

    # ---- un-flatten the wide output, then apply stride / crop to the PyTorch window.
    out_full = out_wide[:, :, :L_raw].reshape(B, C_out, H_full, W_pad)
    return out_full[:, :, 0:(H_out - 1) * sH + 1:sH, 0:(W_out - 1) * sW + 1:sW]


# ----------------------------------------------------------------------------- reference


def conv_reference(x, weight, bias=None, *, stride=1, padding=0, dilation=(1, 1),
                   groups=1, bn_acti=False, bn_gamma=None, bn_beta=None,
                   bn_mean=None, bn_var=None, prelu_alpha=None, eps=1e-3,
                   compute_dtype=None):
    """Pure-JAX reference mirroring the PyTorch `Conv` module (eval-mode BN)."""
    sH, sW = _pair(stride)
    pH, pW = _pair(padding)
    dH, dW = _pair(dilation)
    out = jax.lax.conv_general_dilated(
        x, weight, window_strides=(sH, sW), padding=((pH, pH), (pW, pW)),
        rhs_dilation=(dH, dW), dimension_numbers=("NCHW", "OIHW", "NCHW"),
        feature_group_count=groups)
    if bias is not None:
        out = out + bias[None, :, None, None]
    if bn_acti:
        inv = 1.0 / jnp.sqrt(bn_var + eps)
        out = ((out - bn_mean[None, :, None, None]) * (bn_gamma * inv)[None, :, None, None]
               + bn_beta[None, :, None, None])
        a = prelu_alpha[None, :, None, None]
        out = jnp.where(out >= 0, out, a * out)
    return out


if __name__ == "__main__":
    key = jax.random.PRNGKey(0)
    ks = jax.random.split(key, 10)

    B, nIn, nOut, H, W = 2, 4, 8, 16, 16

    # Integer-grid inputs keep every product exactly representable, so the MXU/VPU
    # results match the XLA reference to float32 rounding regardless of precision mode.
    x = jax.random.randint(ks[0], (B, nIn, H, W), -8, 9).astype(jnp.float32)
    w3 = jax.random.randint(ks[1], (nOut, nIn, 3, 3), -8, 9).astype(jnp.float32) / 8.0
    gamma = 1.0 + 0.1 * jax.random.normal(ks[2], (nOut,), dtype=jnp.float32)
    beta = 0.1 * jax.random.normal(ks[3], (nOut,), dtype=jnp.float32)
    mean = 0.1 * jax.random.normal(ks[4], (nOut,), dtype=jnp.float32)
    var = jnp.abs(jax.random.normal(ks[5], (nOut,), dtype=jnp.float32)) + 0.5
    alpha = jnp.full((nOut,), 0.25, dtype=jnp.float32)
    bn_kwargs = dict(bn_gamma=gamma, bn_beta=beta, bn_mean=mean, bn_var=var,
                     prelu_alpha=alpha, eps=1e-3)

    # 1) Conv(3x3, s1, p1) + BN + PReLU  (groups=1 -> fused-K MXU path with im2col slab).
    kw1 = dict(stride=1, padding=1, dilation=(1, 1), groups=1, bn_acti=True, **bn_kwargs)
    out1 = jax.block_until_ready(conv_forward(x, w3, None, **kw1))
    ref1 = conv_reference(x, w3, None, **kw1)
    assert out1.shape == (B, nOut, H, W), out1.shape
    assert jnp.allclose(out1, ref1, atol=1e-3, rtol=1e-3), "mismatch (3x3 bn_acti=True)"

    # 2) Plain Conv(1x1) with bias, no BN/activation (single-tap MXU path, no slab).
    w1 = jax.random.randint(ks[6], (nOut, nIn, 1, 1), -8, 9).astype(jnp.float32) / 8.0
    b1 = jax.random.randint(ks[7], (nOut,), -8, 9).astype(jnp.float32) / 8.0
    kw2 = dict(stride=1, padding=0, dilation=(1, 1), groups=1, bn_acti=False)
    out2 = jax.block_until_ready(conv_forward(x, w1, b1, **kw2))
    ref2 = conv_reference(x, w1, b1, **kw2)
    assert out2.shape == (B, nOut, H, W), out2.shape
    assert jnp.allclose(out2, ref2, atol=1e-3, rtol=1e-3), "mismatch (1x1 bias)"

    # 3) Depthwise dilated Conv(3x3, d=2, p=2, groups=nOut) + BN + PReLU
    #    (SEDNet channel-wise dilated conv -> VPU FMA path, no MXU).
    x_dw = jax.random.randint(ks[8], (B, nOut, H, W), -8, 9).astype(jnp.float32)
    w_dw = jax.random.randint(ks[9], (nOut, 1, 3, 3), -8, 9).astype(jnp.float32) / 8.0
    kw3 = dict(stride=1, padding=2, dilation=(2, 2), groups=nOut, bn_acti=True, **bn_kwargs)
    out3 = jax.block_until_ready(conv_forward(x_dw, w_dw, None, **kw3))
    ref3 = conv_reference(x_dw, w_dw, None, **kw3)
    assert out3.shape == (B, nOut, H, W), out3.shape
    assert jnp.allclose(out3, ref3, atol=1e-3, rtol=1e-3), "mismatch (depthwise dilated)"

    print("KERNEL_OK")
</pallas_src>

<mosaic_0001>
module attributes {stable_mosaic.version = 11 : i64} {
  func.func @_conv_fused_kernel(%arg0: i32, %arg1: i32, %arg2: i32, %arg3: memref<1x8x432xf32, #tpu.memory_space<vmem>>, %arg4: memref<8x72xf32, #tpu.memory_space<vmem>>, %arg5: memref<8x3xf32, #tpu.memory_space<vmem>>, %arg6: memref<1x8x384xf32, #tpu.memory_space<vmem>>, %arg7: memref<72x384xf32, #tpu.memory_space<vmem>>) attributes {dimension_semantics = [#tpu.dimension_semantics<parallel>, #tpu.dimension_semantics<parallel>, #tpu.dimension_semantics<arbitrary>], iteration_bounds = array<i64: 2, 1, 1>, scalar_prefetch = 0 : i64, scratch_operands = 1 : i64, tpu.core_type = #tpu.core_type<tc>, window_params = [{transform_indices = @transform_0, window_bounds = array<i64: 1, 8, 432>}, {transform_indices = @transform_1, window_bounds = array<i64: 8, 72>}, {transform_indices = @transform_2, window_bounds = array<i64: 8, 3>}, {transform_indices = @transform_3, window_bounds = array<i64: 1, 8, 384>}]} {
    %c0_i32 = arith.constant 0 : i32
    %0 = arith.cmpi eq, %arg2, %c0_i32 : i32
    %1 = arith.extui %0 : i1 to i32
    %c0_i32_0 = arith.constant 0 : i32
    %2 = arith.cmpi ne, %1, %c0_i32_0 : i32
    scf.if %2 {
      %c0_10 = arith.constant 0 : index
      %c0_11 = arith.constant 0 : index
      %c0_12 = arith.constant 0 : index
      %22 = vector.load %arg3[%c0_10, %c0_11, %c0_12] : memref<1x8x432xf32, #tpu.memory_space<vmem>>, vector<1x8x384xf32>
      %23 = vector.shape_cast %22 : vector<1x8x384xf32> to vector<8x384xf32>
      %c0_13 = arith.constant 0 : index
      %c0_14 = arith.constant 0 : index
      %24 = vector.load %arg7[%c0_13, %c0_14] : memref<72x384xf32, #tpu.memory_space<vmem>>, vector<8x384xf32>
      tpu.vector_store %arg7[%c0_13, %c0_14], %23 {strides = array<i32>} : memref<72x384xf32, #tpu.memory_space<vmem>>, vector<8x384xf32>,
      %c0_15 = arith.constant 0 : index
      %c0_16 = arith.constant 0 : index
      %c1 = arith.constant 1 : index
      %25 = vector.load %arg3[%c0_15, %c0_16, %c1] : memref<1x8x432xf32, #tpu.memory_space<vmem>>, vector<1x8x384xf32>
      %26 = vector.shape_cast %25 : vector<1x8x384xf32> to vector<8x384xf32>
      %c8 = arith.constant 8 : index
      %c0_17 = arith.constant 0 : index
      %27 = vector.load %arg7[%c8, %c0_17] : memref<72x384xf32, #tpu.memory_space<vmem>>, vector<8x384xf32>
      tpu.vector_store %arg7[%c8, %c0_17], %26 {strides = array<i32>} : memref<72x384xf32, #tpu.memory_space<vmem>>, vector<8x384xf32>,
      %c0_18 = arith.constant 0 : index
      %c0_19 = arith.constant 0 : index
      %c2 = arith.constant 2 : index
      %28 = vector.load %arg3[%c0_18, %c0_19, %c2] : memref<1x8x432xf32, #tpu.memory_space<vmem>>, vector<1x8x384xf32>
      %29 = vector.shape_cast %28 : vector<1x8x384xf32> to vector<8x384xf32>
      %c16 = arith.constant 16 : index
      %c0_20 = arith.constant 0 : index
      %30 = vector.load %arg7[%c16, %c0_20] : memref<72x384xf32, #tpu.memory_space<vmem>>, vector<8x384xf32>
      tpu.vector_store %arg7[%c16, %c0_20], %29 {strides = array<i32>} : memref<72x384xf32, #tpu.memory_space<vmem>>, vector<8x384xf32>,
      %c0_21 = arith.constant 0 : index
      %c0_22 = arith.constant 0 : index
      %c18 = arith.constant 18 : index
      %31 = vector.load %arg3[%c0_21, %c0_22, %c18] : memref<1x8x432xf32, #tpu.memory_space<vmem>>, vector<1x8x384xf32>
      %32 = vector.shape_cast %31 : vector<1x8x384xf32> to vector<8x384xf32>
      %c24 = arith.constant 24 : index
      %c0_23 = arith.constant 0 : index
      %33 = vector.load %arg7[%c24, %c0_23] : memref<72x384xf32, #tpu.memory_space<vmem>>, vector<8x384xf32>
      tpu.vector_store %arg7[%c24, %c0_23], %32 {strides = array<i32>} : memref<72x384xf32, #tpu.memory_space<vmem>>, vector<8x384xf32>,
      %c0_24 = arith.constant 0 : index
      %c0_25 = arith.constant 0 : index
      %c19 = arith.constant 19 : index
      %34 = vector.load %arg3[%c0_24, %c0_25, %c19] : memref<1x8x432xf32, #tpu.memory_space<vmem>>, vector<1x8x384xf32>
      %35 = vector.shape_cast %34 : vector<1x8x384xf32> to vector<8x384xf32>
      %c32 = arith.constant 32 : index
      %c0_26 = arith.constant 0 : index
      %36 = vector.load %arg7[%c32, %c0_26] : memref<72x384xf32, #tpu.memory_space<vmem>>, vector<8x384xf32>
      tpu.vector_store %arg7[%c32, %c0_26], %35 {strides = array<i32>} : memref<72x384xf32, #tpu.memory_space<vmem>>, vector<8x384xf32>,
      %c0_27 = arith.constant 0 : index
      %c0_28 = arith.constant 0 : index
      %c20 = arith.constant 20 : index
      %37 = vector.load %arg3[%c0_27, %c0_28, %c20] : memref<1x8x432xf32, #tpu.memory_space<vmem>>, vector<1x8x384xf32>
      %38 = vector.shape_cast %37 : vector<1x8x384xf32> to vector<8x384xf32>
      %c40 = arith.constant 40 : index
      %c0_29 = arith.constant 0 : index
      %39 = vector.load %arg7[%c40, %c0_29] : memref<72x384xf32, #tpu.memory_space<vmem>>, vector<8x384xf32>
      tpu.vector_store %arg7[%c40, %c0_29], %38 {strides = array<i32>} : memref<72x384xf32, #tpu.memory_space<vmem>>, vector<8x384xf32>,
      %c0_30 = arith.constant 0 : index
      %c0_31 = arith.constant 0 : index
      %c36 = arith.constant 36 : index
      %40 = vector.load %arg3[%c0_30, %c0_31, %c36] : memref<1x8x432xf32, #tpu.memory_space<vmem>>, vector<1x8x384xf32>
      %41 = vector.shape_cast %40 : vector<1x8x384xf32> to vector<8x384xf32>
      %c48 = arith.constant 48 : index
      %c0_32 = arith.constant 0 : index
      %42 = vector.load %arg7[%c48, %c0_32] : memref<72x384xf32, #tpu.memory_space<vmem>>, vector<8x384xf32>
      tpu.vector_store %arg7[%c48, %c0_32], %41 {strides = array<i32>} : memref<72x384xf32, #tpu.memory_space<vmem>>, vector<8x384xf32>,
      %c0_33 = arith.constant 0 : index
      %c0_34 = arith.constant 0 : index
      %c37 = arith.constant 37 : index
      %43 = vector.load %arg3[%c0_33, %c0_34, %c37] : memref<1x8x432xf32, #tpu.memory_space<vmem>>, vector<1x8x384xf32>
      %44 = vector.shape_cast %43 : vector<1x8x384xf32> to vector<8x384xf32>
      %c56 = arith.constant 56 : index
      %c0_35 = arith.constant 0 : index
      %45 = vector.load %arg7[%c56, %c0_35] : memref<72x384xf32, #tpu.memory_space<vmem>>, vector<8x384xf32>
      tpu.vector_store %arg7[%c56, %c0_35], %44 {strides = array<i32>} : memref<72x384xf32, #tpu.memory_space<vmem>>, vector<8x384xf32>,
      %c0_36 = arith.constant 0 : index
      %c0_37 = arith.constant 0 : index
      %c38 = arith.constant 38 : index
      %46 = vector.load %arg3[%c0_36, %c0_37, %c38] : memref<1x8x432xf32, #tpu.memory_space<vmem>>, vector<1x8x384xf32>
      %47 = vector.shape_cast %46 : vector<1x8x384xf32> to vector<8x384xf32>
      %c64 = arith.constant 64 : index
      %c0_38 = arith.constant 0 : index
      %48 = vector.load %arg7[%c64, %c0_38] : memref<72x384xf32, #tpu.memory_space<vmem>>, vector<8x384xf32>
      tpu.vector_store %arg7[%c64, %c0_38], %47 {strides = array<i32>} : memref<72x384xf32, #tpu.memory_space<vmem>>, vector<8x384xf32>,
    } else {
    }
    %c0 = arith.constant 0 : index
    %c0_1 = arith.constant 0 : index
    %3 = vector.load %arg4[%c0, %c0_1] : memref<8x72xf32, #tpu.memory_space<vmem>>, vector<8x72xf32>
    %c0_2 = arith.constant 0 : index
    %c0_3 = arith.constant 0 : index
    %4 = vector.load %arg7[%c0_2, %c0_3] : memref<72x384xf32, #tpu.memory_space<vmem>>, vector<72x384xf32>
    %cst = arith.constant dense<0.000000e+00> : vector<8x384xf32>
    %5 = tpu.matmul %3, %4, %cst {dimension_numbers = #tpu.dot_dimension_numbers<[1], [0], [0], [1], [0, 0, 1, 1], [], []>} : vector<8x72xf32>, vector<72x384xf32>, vector<8x384xf32> -> vector<8x384xf32>
    %c0_4 = arith.constant 0 : index
    %c0_5 = arith.constant 0 : index
    %6 = vector.load %arg5[%c0_4, %c0_5] : memref<8x3xf32, #tpu.memory_space<vmem>>, vector<8x3xf32>
    %7 = vector.extract_strided_slice %6 {offsets = [0, 0], sizes = [8, 1], strides = [1, 1]} : vector<8x3xf32> to vector<8x1xf32>
    %8 = vector.broadcast %7 : vector<8x1xf32> to vector<8x384xf32>
    %9 = arith.mulf %5, %8 : vector<8x384xf32>
    %10 = vector.extract_strided_slice %6 {offsets = [0, 1], sizes = [8, 1], strides = [1, 1]} : vector<8x3xf32> to vector<8x1xf32>
    %11 = vector.broadcast %10 : vector<8x1xf32> to vector<8x384xf32>
    %12 = arith.addf %9, %11 : vector<8x384xf32>
    %cst_6 = arith.constant 0.000000e+00 : f32
    %13 = vector.broadcast %cst_6 : f32 to vector<8x384xf32>
    %14 = arith.cmpf oge, %12, %13 : vector<8x384xf32>
    %15 = vector.extract_strided_slice %6 {offsets = [0, 2], sizes = [8, 1], strides = [1, 1]} : vector<8x3xf32> to vector<8x1xf32>
    %16 = vector.broadcast %15 : vector<8x1xf32> to vector<8x384xf32>
    %17 = arith.mulf %16, %12 : vector<8x384xf32>
    %18 = arith.select %14, %12, %17 : vector<8x384xi1>, vector<8x384xf32>
    %c0_7 = arith.constant 0 : index
    %c0_8 = arith.constant 0 : index
    %c0_9 = arith.constant 0 : index
    %19 = vector.load %arg6[%c0_7, %c0_8, %c0_9] : memref<1x8x384xf32, #tpu.memory_space<vmem>>, vector<1x8x384xf32>
    %20 = vector.shape_cast %19 : vector<1x8x384xf32> to vector<8x384xf32>
    %21 = vector.shape_cast %18 : vector<8x384xf32> to vector<1x8x384xf32>
    tpu.vector_store %arg6[%c0_7, %c0_8, %c0_9], %21 {strides = array<i32>} : memref<1x8x384xf32, #tpu.memory_space<vmem>>, vector<1x8x384xf32>,
    return
  }
  func.func @transform_0(%arg0: i32, %arg1: i32, %arg2: i32) -> (i32, i32, i32) {
    %c0_i32 = arith.constant 0 : i32
    %c0_i32_0 = arith.constant 0 : i32
    %c0_i32_1 = arith.constant 0 : i32
    return %arg0, %c0_i32, %c0_i32_0 : i32, i32, i32
  }
  func.func @transform_1(%arg0: i32, %arg1: i32, %arg2: i32) -> (i32, i32) {
    %c0_i32 = arith.constant 0 : i32
    %c0_i32_0 = arith.constant 0 : i32
    return %arg2, %c0_i32 : i32, i32
  }
  func.func @transform_2(%arg0: i32, %arg1: i32, %arg2: i32) -> (i32, i32) {
    %c0_i32 = arith.constant 0 : i32
    %c0_i32_0 = arith.constant 0 : i32
    return %arg2, %c0_i32 : i32, i32
  }
  func.func @transform_3(%arg0: i32, %arg1: i32, %arg2: i32) -> (i32, i32, i32) {
    %c0_i32 = arith.constant 0 : i32
    return %arg0, %arg2, %arg1 : i32, i32, i32
  }
}

</mosaic_0001>

<bundles_post_ra>
// kernel: tpu_custom_call.1
= control target key start
LH: loop header
LB: loop body
LE: loop exit
PB: predicated region body
PF: predicated region fallthrough
CT: control target
= control target key end

     0   :  { %8 = vsyncpa [#allocation4], 0  ;;  %s1292_s0 = inlined_call_operand.hbm [shape: f32[2,8,432], index: 0, kind: input, shape index: {}]   ;;  %s1293_s1 = inlined_call_operand.vmem [shape: f32[8,72], index: 1, kind: input, shape index: {}]   ;;  %s1294_s2 = inlined_call_operand.vmem [shape: f32[8,3], index: 2, kind: input, shape index: {}]   ;;  %s1295_s3 = inlined_call_operand.hbm [shape: f32[2,8,384], index: 3, kind: output, shape index: {}]  }
   0x1   :  { %10 = vsyncpa [#allocation4 + $0x1], 0 }
   0x2   :  { %11 = vsyncpa [#allocation5], 0 }
   0x3   :  { %13 = vsyncpa [#allocation5 + $0x1], 0  ;;  %s1077_s12 = smov 0   ;;  %s1079_s13 = smov 0  }
   0x4   :  { %s1081_s14 = smov 0   ;;  %s1083_s15 = smov 0  }
   0x5   :  { %s1085_s16 = smov 0   ;;  %s1087_s17 = smov 0  }
   0x6 LB: > { %s803_s18 = sadd.s32 4294967295, %s1040_s17   ;;  %s804_s19 = sadd.s32 4294967294, %s1040_s17   ;;  %s1040_s17 = sphi %s1087_s17, %s19_s17   ;;  %s1036_s16 = sphi %s1085_s16, %s1307_s16   ;;  %s1032_s15 = sphi %s1083_s15, %s1306_s15   ;;  %s1028_s14 = sphi %s1081_s14, %s1305_s14   ;;  %s1024_s13 = sphi %s1079_s13, %s1304_s13   ;;  %s1020_s12 = sphi %s1077_s12, %s1303_s12  }
   0x7   : > { %s38_s20 = sadd.s32 1, %s1036_s16  ;;  %s45_s21 = sadd.s32 1, %s1028_s14 }
   0x8   : > { %p40_p0 = scmp.ge.s32.totalorder %s38_s20, 2  ;;  %p52_p1 = scmp.ne.s32.totalorder %s1028_s14, %s1024_s13 }
   0x9   : > { %p53_p2 = scmp.eq.s32.totalorder %s1040_s17, 0  ;;  %p58_p3 = scmp.ne.s32.totalorder %s1024_s13, %s1020_s12 }
   0xa   : > { %s1309_s20 = smov (%p40_p0, %s38_s20), 0  ;;  %p59_p5 = scmp.eq.s32.totalorder %s803_s18, 0 }
   0xb   : > { %p1118_p4 = por %p53_p2, %p52_p1  ;;  %s42_s23 = ssub.s32 %s1036_s16, %s1309_s20 }
   0xc   : > { %p138_p6 = scmp.eq.s32.totalorder %s803_s18, 1  ;;  %p43_p7 = scmp.eq.s32.totalorder %s42_s23, 0 }
   0xd   : > { %p1124_p8 = por %p59_p5, %p58_p3  ;;  %p144_p10 = scmp.eq.s32.totalorder %s804_s19, 1 }
   0xe   : > { %p1128_p9 = por %p138_p6, %p52_p1  ;;  %p865_p13 = scmp.lt.s32.totalorder %s1040_s17, 2 }
   0xf   : > { %s1133_s26 = scalar_select %p43_p7, %s1028_s14, %s45_s21  }
  0x10   : > { %p1135_p11 = por %p144_p10, %p58_p3  ;;  %s178_s28 = sand.u32 1, %s1028_s14  }
  0x11   : > { %s809_s29 = sshll.u32 %s178_s28, 5  ;;  %s819_s30 = sshll.u32 %s1036_s16, 9 }
  0x12   : > { %s1299_s27 = scalar_select %p1135_p11, 1, 0 }
  0x13   : > { %s188_s6 = scalar_lea.hbm %s1292_s0, %s819_s30  ;;  %s182_s7 = scalar_lea.vmem [#allocation3], %s809_s29 }
  0x14   : > { %s190_s8 = sshll.u32 %s182_s7, 4  ;;  %p1148_p0 = pnand %p865_p13, %p1118_p4  ;;  %s191_s8 = int_to_ptr.vmem [resolvable:$true] %s190_s8 }
  0x15   : > { %p812_p1 = scmp.ge.s32.totalorder %s1040_s17, 1  ;;  %p195_p2 = scmp.lt.s32.totalorder %s1040_s17, 3 }
  0x16   : > { %s179_s10 = scalar_lea.sflag [#allocation4], %s178_s28  ;;  %p934_p3 = pneg %p1148_p0 }
  0x17   : > { %s945_s11 = scalar_lea.vmem %s191_s8, 512  ;;  %s1042_s18 = smov [#allocation3]  }
  0x18   : > { %p946_p5 = scmp.ne.s32.totalorder %s191_s8, %s945_s11  ;;  %s950_s19 = sshll.u32 %s1042_s18, 4  ;;  %s951_s19 = int_to_ptr.vmem [resolvable:$false] %s950_s19 }
  0x19   : > { %s952_s21 = scalar_lea.vmem %s951_s19, 1024  ;;  %p953_p10 = scmp.lt.s32.totalorder %s191_s8, %s951_s19 }
  0x1a   : > { %p948_p6 = pnand %p946_p5, %p934_p3  ;;  %p954_p12 = scmp.lt.s32.totalorder %s952_s21, %s945_s11 }
  0x1c   : > { %p949_p7 = pneg %p948_p6  ;;  %p955_p4 = por %p954_p12, %p953_p10 }
  0x1e   : > { %p956_p13 = pnand %p955_p4, %p949_p7 }
  0x20   : > { %959 = shalt.err (!%p956_p13)
}
  0x21   : > { %860 = dma.hbm_to_vmem [thread:$0]  (!%p1148_p0), %s188_s6, 512, %s191_s8, %s179_s10  }
  0x22   : > { %p196_p11 = pnand %p812_p1, %p195_p2 }
  0x23   : > { %s1163_s22 = sand.u32 (!%p196_p11), 1, %s1024_s13  }
  0x24   : > { %199 = sbr.rel (%p196_p11) target bundleno = 438 (0x1b6), region = 32  ;;  %s813_s23 = sshll.u32 (!%p196_p11), %s1163_s22, 5 }
  0x25   : > { %s202_s28 = scalar_lea.sflag (!%p196_p11), [#allocation4], %s1163_s22  ;;  %s205_s29 = scalar_lea.vmem (!%p196_p11), [#allocation3], %s813_s23 }
  0x29   : > { %1011 = dma.done.wait (%p1124_p8), %s202_s28, 512  }
  0x2a   : > { %1013 = vsyncadd (%p1124_p8), %s202_s28, 4294966784  ;;  %v1171_v0 = vld [vmem:[%s205_s29 + $0x8] sm:$0xff]  ;;  %v1173_v1 = vld [vmem:[%s205_s29] sm:$0xff]  ;;  %v1043_v2 = vmov 0.0   ;;  %s1044_s30 = smov 90   ;;  %s1045_s24 = smov 91  }
  0x2b   : > { %830 = vmatprep.subr.mxu1 %v1043_v2  ;;  %559 = vmatprep.mubr.f32.mxu0 %v1043_v2  ;;  %v1179_v3 = vld [vmem:[%s205_s29 + $0x10] sm:$0xff]  ;;  %v440_v4 = vld [vmem:[%s205_s29 + $0x18] sm:$0xff]  ;;  %s1046_s4 = smov 92   ;;  %s1047_s5 = smov 108   ;;  %vm1052_vm0 = vmmov 0   ;;  %v1053_v5 = vmov 1  }
  0x2c   : > { %447 = vrot.lane.b32.xlu0 %v1171_v0, %s1044_s30  ;;  %445 = vrot.lane.b32.xlu1 %v1173_v1, %s1044_s30  ;;  %s1048_s6 = smov 109   ;;  %s1049_s7 = smov 110   ;;  %v1054_v6 = vmov 0   ;;  %v636_v7 = vld [vmem:[%s1294_s2] sm:$0xff]  ;;  %v1055_v8 = vmov 2   ;;  %vm453_vm1 = vcmask 736256  }
  0x2d   : > { %s1050_s8 = smov 126   ;;  %s1051_s9 = smov 127   ;;  %848 = vmatprep.mubr.msk.f32.mxu1 %vm1052_vm0, %v1043_v2  ;;  %929 = vset.pattern.permute.xlu1 %v1053_v5  ;;  %vm427_vm2 = vcmask 744448   ;;  %vm401_vm3 = vcmask 752640   ;;  %vm375_vm4 = vcmask 883712   ;;  %vm349_vm5 = vcmask 891904  }
  0x2e   : > { %928 = vset.pattern.permute.xlu0 %v1054_v6  ;;  %vm323_vm6 = vcmask 900096   ;;  %vm297_vm7 = vcmask 1031168   ;;  %vm271_vm8 = vcmask 1039360   ;;  %v463_v61 = vld [vmem:[%s1293_s1] sm:$0xff]  ;;  %vm491_vm9 = vcmask 588800   ;;  %s851_s21 = smul.u32 24, %s1163_s22 }
  0x2f   : > { %s852_s23 = smul.u32 384, %s1032_s15  ;;  %s1056_s15 = smov [#allocation6]  }
  0x30   : > { %449 = vrot.lane.b32.xlu0 %v1179_v3, %s1044_s30  ;;  %421 = vrot.lane.b32.xlu1 %v1171_v0, %s1045_s24  ;;  %s235_s28 = scalar_lea.vmem [#allocation6], %s851_s21 }
  0x31   : > { %s687_s29 = sshll.u32 %s235_s28, 4  ;;  %s688_s29 = int_to_ptr.vmem [resolvable:$true] %s687_s29 }
  0x34   : > { %423 = vrot.lane.b32.xlu0 %v1179_v3, %s1045_s24  ;;  %419 = vrot.lane.b32.xlu1 %v1173_v1, %s1045_s24 }
  0x38   : > { %451 = vrot.lane.b32.xlu0 %v440_v4, %s1044_s30  ;;  %395 = vrot.lane.b32.xlu1 %v1171_v0, %s1046_s4 }
  0x3c   : > { %397 = vrot.lane.b32.xlu0 %v1179_v3, %s1046_s4  ;;  %393 = vrot.lane.b32.xlu1 %v1173_v1, %s1046_s4 }
  0x40   : > { %425 = vrot.lane.b32.xlu0 %v440_v4, %s1045_s24  ;;  %369 = vrot.lane.b32.xlu1 %v1171_v0, %s1047_s5 }
  0x44   : > { %371 = vrot.lane.b32.xlu0 %v1179_v3, %s1047_s5  ;;  %367 = vrot.lane.b32.xlu1 %v1173_v1, %s1047_s5 }
  0x48   : > { %399 = vrot.lane.b32.xlu0 %v440_v4, %s1046_s4  ;;  %343 = vrot.lane.b32.xlu1 %v1171_v0, %s1048_s6  ;;  %s1250_s4 = scalar_lea.hbm %s1295_s3, %s852_s23 }
  0x4c   : > { %345 = vrot.lane.b32.xlu0 %v1179_v3, %s1048_s6  ;;  %341 = vrot.lane.b32.xlu1 %v1173_v1, %s1048_s6 }
  0x50   : > { %373 = vrot.lane.b32.xlu0 %v440_v4, %s1047_s5  ;;  %317 = vrot.lane.b32.xlu1 %v1171_v0, %s1049_s7  ;;  %s669_s5 = scalar_lea.sflag [#allocation5], %s1163_s22 }
  0x54   : > { %319 = vrot.lane.b32.xlu0 %v1179_v3, %s1049_s7  ;;  %315 = vrot.lane.b32.xlu1 %v1173_v1, %s1049_s7 }
  0x58   : > { %347 = vrot.lane.b32.xlu0 %v440_v4, %s1048_s6  ;;  %291 = vrot.lane.b32.xlu1 %v1171_v0, %s1050_s8  ;;  %s960_s6 = scalar_lea.vmem %s688_s29, 384 }
  0x59   : > { %p961_p8 = scmp.ne.s32.totalorder %s688_s29, %s960_s6 }
  0x5b   : > { %p962_p11 = pnand %p961_p8, %p1128_p9 }
  0x5c   : > { %293 = vrot.lane.b32.xlu0 %v1179_v3, %s1050_s8  ;;  %289 = vrot.lane.b32.xlu1 %v1173_v1, %s1050_s8 }
  0x5d   : > { %p963_p12 = pneg %p962_p11 }
  0x60   : > { %321 = vrot.lane.b32.xlu0 %v440_v4, %s1049_s7  ;;  %265 = vrot.lane.b32.xlu1 %v1171_v0, %s1051_s9  ;;  %s964_s7 = sshll.u32 %s1056_s15, 4  ;;  %s965_s7 = int_to_ptr.vmem [resolvable:$false] %s964_s7 }
  0x61   : > { %p967_p0 = scmp.lt.s32.totalorder %s688_s29, %s965_s7 }
  0x64   : > { %267 = vrot.lane.b32.xlu0 %v1179_v3, %s1051_s9  ;;  %263 = vrot.lane.b32.xlu1 %v1173_v1, %s1051_s9 }
  0x68   : > { %295 = vrot.lane.b32.xlu0 %v440_v4, %s1050_s8  ;;  %269 = vrot.lane.b32.xlu1 %v440_v4, %s1051_s9  ;;  %s966_s8 = scalar_lea.vmem %s965_s7, 768 }
  0x69   : > { %p968_p1 = scmp.lt.s32.totalorder %s966_s8, %s960_s6 }
  0x6b   : > { %p969_p2 = por %p968_p1, %p967_p0 }
  0x6c   : > { %646 = vperm.xlu1 %929, %v636_v7   ;;  %639 = vperm.xlu0 %928, %v636_v7  }
  0x6d   : > { %p970_p3 = pnand %p969_p2, %p963_p12 }
  0x70   : > { %930 = vset.pattern.permute.xlu1 %v1055_v8  ;;  %931 = vset.pattern.permute.xlu0 %v1055_v8 }
  0x71   : > { %656 = vperm.xlu1 %930, %v636_v7  }
  0x9e   : > { %v448_v9 = vpop.permute.xlu0 %447  ;;  %v446_v10 = vpop.permute.xlu1 %445 }
  0x9f   : > { %v454_v14 = vsel %vm453_vm1, %v446_v10, %v448_v9 }
  0xa2   : > { %v450_v11 = vpop.permute.xlu0 %449  ;;  %v422_v12 = vpop.permute.xlu1 %421 }
  0xa3   : > { %v455_v13 = vsel %vm453_vm1, %v448_v9, %v450_v11 }
  0xa4   : > { %509 = vmatprep.subr.mxu0 %v455_v13 }
  0xa5   : > { %510 = vmatpush1.msra.mxu0 %v454_v14 }
  0xa6   : > { %v424_v15 = vpop.permute.xlu0 %423  ;;  %v420_v16 = vpop.permute.xlu1 %419 }
  0xa7   : > { %v429_v17 = vsel %vm427_vm2, %v422_v12, %v424_v15  ;;  %v428_v18 = vsel %vm427_vm2, %v420_v16, %v422_v12 }
  0xa8   : > { %511 = vmatprep.subr.mxu0 %v429_v17 }
  0xa9   : > { %512 = vmatpush1.msra.mxu0 %v428_v18 }
  0xaa   : > { %v452_v19 = vpop.permute.xlu0 %451  ;;  %v396_v20 = vpop.permute.xlu1 %395 }
  0xab   : > { %v456_v21 = vsel %vm453_vm1, %v450_v11, %v452_v19 }
  0xac   : > { %831 = vmatpush3.msra.mxu1 %v456_v21 }
  0xad   : > { %832 = vmatprep.subr.mxu1 %v1043_v2 }
  0xae   : > { %v398_v22 = vpop.permute.xlu0 %397  ;;  %v394_v23 = vpop.permute.xlu1 %393 }
  0xaf   : > { %v403_v24 = vsel %vm401_vm3, %v396_v20, %v398_v22  ;;  %v402_v25 = vsel %vm401_vm3, %v394_v23, %v396_v20 }
  0xb0   : > { %513 = vmatprep.subr.mxu0 %v403_v24 }
  0xb1   : > { %514 = vmatpush1.msra.mxu0 %v402_v25 }
  0xb2   : > { %v426_v26 = vpop.permute.xlu0 %425  ;;  %v370_v27 = vpop.permute.xlu1 %369 }
  0xb3   : > { %v430_v28 = vsel %vm427_vm2, %v424_v15, %v426_v26 }
  0xb4   : > { %833 = vmatpush3.msra.mxu1 %v430_v28 }
  0xb5   : > { %834 = vmatprep.subr.mxu1 %v1043_v2 }
  0xb6   : > { %v372_v29 = vpop.permute.xlu0 %371  ;;  %v368_v30 = vpop.permute.xlu1 %367 }
  0xb7   : > { %v377_v31 = vsel %vm375_vm4, %v370_v27, %v372_v29  ;;  %v376_v32 = vsel %vm375_vm4, %v368_v30, %v370_v27 }
  0xb8   : > { %515 = vmatprep.subr.mxu0 %v377_v31 }
  0xb9   : > { %516 = vmatpush1.msra.mxu0 %v376_v32 }
  0xba   : > { %v400_v33 = vpop.permute.xlu0 %399  ;;  %v344_v34 = vpop.permute.xlu1 %343 }
  0xbb   : > { %v404_v35 = vsel %vm401_vm3, %v398_v22, %v400_v33 }
  0xbc   : > { %835 = vmatpush3.msra.mxu1 %v404_v35 }
  0xbd   : > { %836 = vmatprep.subr.mxu1 %v1043_v2 }
  0xbe   : > { %v346_v36 = vpop.permute.xlu0 %345  ;;  %v342_v37 = vpop.permute.xlu1 %341 }
  0xbf   : > { %v351_v38 = vsel %vm349_vm5, %v344_v34, %v346_v36  ;;  %v350_v39 = vsel %vm349_vm5, %v342_v37, %v344_v34 }
  0xc0   : > { %517 = vmatprep.subr.mxu0 %v351_v38 }
  0xc1   : > { %518 = vmatpush1.msra.mxu0 %v350_v39 }
  0xc2   : > { %v374_v40 = vpop.permute.xlu0 %373  ;;  %v318_v41 = vpop.permute.xlu1 %317 }
  0xc3   : > { %v378_v42 = vsel %vm375_vm4, %v372_v29, %v374_v40 }
  0xc4   : > { %837 = vmatpush3.msra.mxu1 %v378_v42 }
  0xc5   : > { %838 = vmatprep.subr.mxu1 %v1043_v2 }
  0xc6   : > { %v320_v43 = vpop.permute.xlu0 %319  ;;  %v316_v44 = vpop.permute.xlu1 %315 }
  0xc7   : > { %v325_v45 = vsel %vm323_vm6, %v318_v41, %v320_v43  ;;  %v324_v46 = vsel %vm323_vm6, %v316_v44, %v318_v41 }
  0xc8   : > { %519 = vmatprep.subr.mxu0 %v325_v45 }
  0xc9   : > { %520 = vmatpush1.msra.mxu0 %v324_v46 }
  0xca   : > { %v348_v47 = vpop.permute.xlu0 %347  ;;  %v292_v48 = vpop.permute.xlu1 %291 }
  0xcb   : > { %v352_v49 = vsel %vm349_vm5, %v346_v36, %v348_v47 }
  0xcc   : > { %839 = vmatpush3.msra.mxu1 %v352_v49 }
  0xcd   : > { %840 = vmatprep.subr.mxu1 %v1043_v2 }
  0xce   : > { %v294_v50 = vpop.permute.xlu0 %293  ;;  %v290_v51 = vpop.permute.xlu1 %289 }
  0xcf   : > { %v299_v52 = vsel %vm297_vm7, %v292_v48, %v294_v50  ;;  %v298_v53 = vsel %vm297_vm7, %v290_v51, %v292_v48 }
  0xd0   : > { %521 = vmatprep.subr.mxu0 %v299_v52 }
  0xd1   : > { %522 = vmatpush1.msra.mxu0 %v298_v53 }
  0xd2   : > { %v322_v54 = vpop.permute.xlu0 %321  ;;  %v266_v55 = vpop.permute.xlu1 %265 }
  0xd3   : > { %v326_v56 = vsel %vm323_vm6, %v320_v43, %v322_v54 }
  0xd4   : > { %841 = vmatpush3.msra.mxu1 %v326_v56 }
  0xd5   : > { %842 = vmatprep.subr.mxu1 %v1043_v2 }
  0xd6   : > { %v268_v57 = vpop.permute.xlu0 %267  ;;  %v264_v58 = vpop.permute.xlu1 %263 }
  0xd7   : > { %v273_v59 = vsel %vm271_vm8, %v266_v55, %v268_v57  ;;  %v272_v60 = vsel %vm271_vm8, %v264_v58, %v266_v55 }
  0xd8   : > { %523 = vmatprep.subr.mxu0 %v273_v59 }
  0xd9   : > { %524 = vmatpush1.msra.mxu0 %v272_v60 }
  0xda   : > { %v296_v62 = vpop.permute.xlu0 %295  ;;  %v270_v63 = vpop.permute.xlu1 %269  ;;  %525 = vmatprep.subr.mxu0 %v1171_v0 }
  0xdb   : > { %526 = vmatpush1.msra.mxu0 %v1173_v1  ;;  %v300_v4 = vsel %vm297_vm7, %v294_v50, %v296_v62  ;;  %v274_v5 = vsel %vm271_vm8, %v268_v57, %v270_v63 }
  0xdc   : > { %814 = vmatmul.mubr.msk.f32.vlgmr.msra.gmra.mxu0 %vm491_vm9, %v463_v61  ;;  %843 = vmatpush3.msra.mxu1 %v300_v4 }
  0xdd   : > { %844 = vmatprep.subr.mxu1 %v1043_v2 }
  0xde   : > { %845 = vmatpush3.msra.mxu1 %v274_v5 }
  0xdf   : > { %846 = vmatprep.subr.mxu1 %v1043_v2 }
  0xe0   : > { %847 = vmatpush3.msra.mxu1 %v1179_v3 }
  0xe1   : > { %849 = vmatmul.mubr.msk.f32.vlgmr.msra.gmra.mxu1 %vm491_vm9, %v463_v61 }
  0xe7   : > { %v647_v6 = vpop.permute.xlu1 %646  ;;  %v640_v7 = vpop.permute.xlu0 %639 }
  0xec   : > { %v657_v9 = vpop.permute.xlu1 %656 }
 0x19c   : > { %v561_v8 = vpop.f32.mrf.mxu0 }
 0x19d   : > { %v642_v0 = vmul.f32 %v640_v7, %v561_v8 }
 0x19e   : > { %v563_v1 = vpop.f32.mrf.mxu0 }
 0x19f   : > { %v649_v10 = vadd.f32 %v647_v6, %v642_v0  ;;  %v643_v11 = vmul.f32 %v640_v7, %v563_v1 }
 0x1a1   : > { %vm652_vm10 = vcmp.ge.f32.partialorder %v649_v10, 0.0  ;;  %v650_v12 = vadd.f32 %v647_v6, %v643_v11  ;;  %v659_v13 = vmul.f32 %v657_v9, %v649_v10  ;;  %v632_v14 = vpop.f32.mrf.mxu1 }
 0x1a2   : > { %v644_v15 = vmul.f32 %v640_v7, %v632_v14 }
 0x1a3   : > { %vm653_vm11 = vcmp.ge.f32.partialorder %v650_v12, 0.0  ;;  %v660_v2 = vmul.f32 %v657_v9, %v650_v12  ;;  %v662_v3 = vsel %vm652_vm10, %v649_v10, %v659_v13  ;;  %v850_v16 = vpop.f32.mrf.mxu1 }
 0x1a4   : > { %665 = vst [vmem:[%s235_s28] sm:$0xff] %v662_v3  ;;  %v651_v17 = vadd.f32 %v647_v6, %v644_v15 }
 0x1a5   : > { %v663_v18 = vsel %vm653_vm11, %v650_v12, %v660_v2 }
 0x1a6   : > { %666 = vst [vmem:[%s235_s28 + $0x8] sm:$0xff] %v663_v18  ;;  %vm654_vm12 = vcmp.ge.f32.partialorder %v651_v17, 0.0  ;;  %v661_v19 = vmul.f32 %v657_v9, %v651_v17 }
 0x1a8   : > { %v664_v20 = vsel %vm654_vm12, %v651_v17, %v661_v19 }
 0x1a9   : > { %667 = vst [vmem:[%s235_s28 + $0x10] sm:$0xff] %v664_v20 }
 0x1aa   : > { %973 = shalt.err (!%p970_p3)
}
 0x1ab   : > { %s974_s9 = scalar_lea.hbm %s1250_s4, 384  ;;  %s978_s11 = scalar_lea.hbm %s1295_s3, 768 }
 0x1ac   : > { %p975_p5 = scmp.ne.s32.totalorder %s1250_s4, %s974_s9  ;;  %p979_p10 = scmp.lt.s32.totalorder %s1250_s4, %s1295_s3 }
 0x1ad   : > { %p980_p4 = scmp.lt.s32.totalorder %s978_s11, %s974_s9 }
 0x1ae   : > { %p976_p6 = pnand %p975_p5, %p1128_p9 }
 0x1af   : > { %p981_p13 = por %p980_p4, %p979_p10 }
 0x1b0   : > { %p977_p7 = pneg %p976_p6 }
 0x1b2   : > { %p982_p8 = pnand %p981_p13, %p977_p7 }
 0x1b4   : > { %985 = shalt.err (!%p982_p8)
}
 0x1b5   : > { %855 = dma.vmem_to_hbm [thread:$0]  (%p1128_p9), %s688_s29, 384, %s1250_s4, %s669_s5  }
 0x1b6 PF: > { %s699_s21 = sand.u32 1, %s1020_s12   ;;  %p1301_p11 = scmp.ne.s32.totalorder %s1299_s27, 0 }
 0x1b7   : > { %p1302_p12 = scmp.ge.s32.totalorder %s1040_s17, 2  ;;  %s700_s23 = scalar_lea.sflag [#allocation5], %s699_s21 }
 0x1b9   : > { %p862_p0 = pnand %p1302_p12, %p1301_p11 }
 0x1bb   : > { %p863_p1 = pneg %p862_p0 }
 0x1bd   : > { %1015 = dma.done.wait (%p863_p1), %s700_s23, 384  }
 0x1be   : > { %1017 = vsyncadd (%p863_p1), %s700_s23, 4294966912  ;;  %s19_s17 = sadd.s32 1, %s1040_s17   ;;  %s1303_s12 = smov %s1024_s13 }
 0x1bf   : > { %p16_p2 = scmp.ge.s32.totalorder %s19_s17, 4   ;;  %s1304_s13 = smov %s1028_s14 }
 0x1c0   : > { %s1305_s14 = smov %s1133_s26  ;;  %s1306_s15 = smov %s1036_s16 }
 0x1c1   : > { %s1307_s16 = smov %s1309_s20  ;;  %18 = sbr.rel (!%p16_p2) target bundleno = 6 (0x6), region = 87 }
 0x1c6   :  { %705 = vsyncpa [#allocation4], 1 }
 0x1c7   :  { %707 = vsyncpa [#allocation4 + $0x1], 1 }
 0x1c8   :  { %708 = vsyncpa [#allocation5], 1 }
 0x1c9   :  { %710 = vsyncpa [#allocation5 + $0x1], 1 }

</bundles_post_ra>
